<compile_context>
chip_gen: v5e
topology: v5e:2x2
jax: 0.10.0
libtpu: 0.0.40
codegen_flags: <defaults>
</compile_context>

<pallas_src>
import math

import jax
import jax.numpy as jnp
from jax import lax
from jax.experimental import pallas as pl
from jax.experimental.pallas import tpu as pltpu


def make_attention_kernel(num_heads, in_feats, d_v, bb, t1, t2):
    # "nt" contraction: (M, D) x (N, D) -> (M, N); contracts last dims, no transpose.
    NT_DIMS = (((1,), (1,)), ((), ()))
    F = in_feats

    def kernel(xq_ref, xk_ref, xv_ref,
               a_ref, c_ref, wv_ref, bv_ref, wo_ref, bo_ref,
               o_ref, ctx_ref):
        # Whole batch-block slabs; cast once to bf16 for MXU operands.
        xq = xq_ref[...].astype(jnp.bfloat16)   # (bb*t1, F)
        xk = xk_ref[...].astype(jnp.bfloat16)   # (bb*t2, F)
        xv = xv_ref[...].astype(jnp.bfloat16)   # (bb*t2, F)

        # Head-fused "query-side" transform (score fold): one lane-dense matmul,
        # output width H*F = 128.  Replaces the separate Q and K projections.
        p_all = (jnp.dot(xq, a_ref[...], preferred_element_type=jnp.float32)
                 + c_ref[...]).astype(jnp.bfloat16)            # (bb*t1, H*F)

        # Head-fused value projection: one matmul instead of H tiny ones.
        v_all = (jnp.dot(xv, wv_ref[...], preferred_element_type=jnp.float32)
                 + bv_ref[...]).astype(jnp.bfloat16)           # (bb*t2, H*d_v)

        wo = wo_ref[...]                                        # (H*d_v, out) bf16
        bo = bo_ref[...]                                        # (1, out) f32

        # Batch-outer / head-inner; each batch writes its tile straight to o_ref.
        for b in range(bb):
            r1 = slice(b * t1, (b + 1) * t1)
            r2 = slice(b * t2, (b + 1) * t2)
            xk_b = xk[r2]                                       # (t2, F)

            for h in range(num_heads):
                p_h = p_all[r1, h * F:(h + 1) * F]              # (t1, F)
                # Scores: full F-wide contraction (not d_k-wide), stable softmax in f32.
                s = lax.dot_general(p_h, xk_b, NT_DIMS,
                                    preferred_element_type=jnp.float32)   # (t1, t2)
                s = s - jnp.max(s, axis=-1, keepdims=True)
                e = jnp.exp(s)
                p = e * pl.reciprocal(jnp.sum(e, axis=-1, keepdims=True),
                                      approx=True)
                v_h = v_all[r2, h * d_v:(h + 1) * d_v]          # (t2, d_v)
                ctx_h = jnp.dot(p.astype(jnp.bfloat16), v_h,
                                preferred_element_type=jnp.float32)       # (t1, d_v)
                # Pack per-head context at its lane offset; output projection is
                # then a single contraction over H*d_v.
                ctx_ref[:, h * d_v:(h + 1) * d_v] = ctx_h

            ctx = ctx_ref[...].astype(jnp.bfloat16)             # (t1, H*d_v)
            out_b = jnp.dot(ctx, wo, preferred_element_type=jnp.float32) + bo
            o_ref[pl.ds(b * t1, t1), :] = out_b.astype(o_ref.dtype)

    return kernel


def prepare_params(params, *, num_heads, d_k, d_v):
    """One-time host-side prep.  PyTorch nn.Linear weights are (out, in).

    Folds the 1/sqrt(d_k) scale and the Q/K projections into per-head (F, F)
    matrices A_h = scale * Wq_h^T Wk_h and vectors c_h = scale * bq_h Wk_h
    (exact under softmax: dropped bias terms are constant per query row),
    packs them head-fused to (F, H*F)/(1, H*F), and keeps V / output-projection
    weights combined across heads.  MXU operands are cast to bf16.
    """
    scale = 1.0 / math.sqrt(d_k)
    H = num_heads
    in_feats = params["wq"].shape[1]
    out_feats = params["wo"].shape[0]
    F = in_feats

    wq3 = params["wq"].reshape(H, d_k, F)
    wk3 = params["wk"].reshape(H, d_k, F)
    bq2 = params["bq"].reshape(H, d_k)

    a = scale * jnp.einsum("hkf,hkg->hfg", wq3, wk3)            # (H, F, F)
    c = scale * jnp.einsum("hk,hkf->hf", bq2, wk3)              # (H, F)
    a_packed = jnp.transpose(a, (1, 0, 2)).reshape(F, H * F)    # (F, H*F)
    c_packed = c.reshape(1, H * F)

    return {
        "a": a_packed.astype(jnp.bfloat16),                     # (F, H*F)
        "c": c_packed.astype(jnp.float32),                      # (1, H*F)
        "wv": params["wv"].T.astype(jnp.bfloat16),              # (F, H*d_v)
        "bv": params["bv"].reshape(1, H * d_v).astype(jnp.float32),
        "wo": params["wo"].T.astype(jnp.bfloat16),               # (H*d_v, out)
        "bo": params["bo"].reshape(1, out_feats).astype(jnp.float32),
    }


def _tensorcores_per_chip():
    """Best-effort TensorCore count per chip: v4/v5p (megacore) and v7x -> 2;
    v5e/v6e (single TC) -> 1.  Defaults to 1 on anything unrecognized."""
    try:
        kind = jax.devices()[0].device_kind.lower()
    except Exception:
        return 1
    if "lite" in kind or "v5e" in kind or "v6e" in kind:
        return 1
    if "v7" in kind or "v4" in kind or "v5p" in kind:
        return 2
    return 1


@jax.jit
def scaled_dot_prod_att_v1(query, key, value, prep):
    """Pallas forward of ScaledDotProdAttV1 (mask=None, dropout_rate=0)."""
    B, T1, F = query.shape
    _, T2, _ = key.shape
    num_heads = prep["a"].shape[-1] // F
    d_v = prep["wv"].shape[-1] // num_heads
    out_feats = prep["bo"].shape[-1]

    # Single-TC chips: one big step (best sublane fill, no per-step overhead).
    # Multi-TC chips: 2 parallel batch blocks when B is even.
    ncores = _tensorcores_per_chip()
    G = ncores if (ncores > 1 and B % ncores == 0) else 1
    BB = B // G

    # Free reshapes: present activations as lane-dense 2-D slabs.
    xq = query.reshape(B * T1, F)
    xk = key.reshape(B * T2, F)
    xv = value.reshape(B * T2, F)

    kernel = make_attention_kernel(num_heads, F, d_v, BB, T1, T2)

    def full(arr):
        n = arr.ndim
        return pl.BlockSpec(arr.shape, lambda i, n=n: (0,) * n)

    out = pl.pallas_call(
        kernel,
        out_shape=jax.ShapeDtypeStruct((B * T1, out_feats), jnp.float32),
        grid_spec=pltpu.PrefetchScalarGridSpec(
            num_scalar_prefetch=0,
            grid=(G,),
            in_specs=[
                pl.BlockSpec((BB * T1, F), lambda i: (i, 0)),
                pl.BlockSpec((BB * T2, F), lambda i: (i, 0)),
                pl.BlockSpec((BB * T2, F), lambda i: (i, 0)),
                full(prep["a"]), full(prep["c"]),
                full(prep["wv"]), full(prep["bv"]),
                full(prep["wo"]), full(prep["bo"]),
            ],
            out_specs=pl.BlockSpec((BB * T1, out_feats), lambda i: (i, 0)),
            scratch_shapes=[pltpu.VMEM((T1, num_heads * d_v), jnp.float32)],
        ),
        compiler_params=pltpu.CompilerParams(
            dimension_semantics=("parallel",)),
    )(xq, xk, xv,
      prep["a"], prep["c"], prep["wv"], prep["bv"], prep["wo"], prep["bo"])

    return out.reshape(B, T1, out_feats)


def reference_attention(query, key, value, params, *, num_heads, d_k, d_v):
    """Plain-JAX f32 reference matching the PyTorch forward (mask=None)."""
    B, T1, _ = query.shape
    _, T2, _ = key.shape

    def lin(x, w, b):
        return x @ w.T + b

    q = lin(query, params["wq"], params["bq"]).reshape(B, T1, num_heads, d_k)
    k = lin(key, params["wk"], params["bk"]).reshape(B, T2, num_heads, d_k)
    v = lin(value, params["wv"], params["bv"]).reshape(B, T2, num_heads, d_v)
    q = q.transpose(0, 2, 1, 3)
    k = k.transpose(0, 2, 1, 3)
    v = v.transpose(0, 2, 1, 3)
    scores = jnp.einsum("bhqd,bhkd->bhqk", q, k) / math.sqrt(d_k)
    attn = jax.nn.softmax(scores, axis=-1)
    x = jnp.einsum("bhqk,bhkd->bhqd", attn, v)
    x = x.transpose(0, 2, 1, 3).reshape(B, T1, num_heads * d_v)
    return lin(x, params["wo"], params["bo"])


if __name__ == "__main__":
    # Module hyperparameters (small, consistent with the forward signature).
    in_feats = 32
    out_feats = 32
    num_heads = 4
    d_k = 8
    d_v = 8
    B, T1, T2 = 2, 8, 8

    key0 = jax.random.PRNGKey(0)
    ks = jax.random.split(key0, 11)

    # Deterministic synthetic parameters (PyTorch Linear layout: (out, in)).
    params = {
        "wq": 0.1 * jax.random.normal(ks[0], (num_heads * d_k, in_feats), jnp.float32),
        "bq": 0.1 * jax.random.normal(ks[1], (num_heads * d_k,), jnp.float32),
        "wk": 0.1 * jax.random.normal(ks[2], (num_heads * d_k, in_feats), jnp.float32),
        "bk": 0.1 * jax.random.normal(ks[3], (num_heads * d_k,), jnp.float32),
        "wv": 0.1 * jax.random.normal(ks[4], (num_heads * d_v, in_feats), jnp.float32),
        "bv": 0.1 * jax.random.normal(ks[5], (num_heads * d_v,), jnp.float32),
        "wo": 0.1 * jax.random.normal(ks[6], (out_feats, num_heads * d_v), jnp.float32),
        "bo": 0.1 * jax.random.normal(ks[7], (out_feats,), jnp.float32),
    }

    query = jax.random.normal(ks[8], (B, T1, in_feats), jnp.float32)
    key = jax.random.normal(ks[9], (B, T2, in_feats), jnp.float32)
    value = jax.random.normal(ks[10], (B, T2, in_feats), jnp.float32)

    # One-time weight preparation (outside the per-call path).
    prep = prepare_params(params, num_heads=num_heads, d_k=d_k, d_v=d_v)
    prep = jax.block_until_ready(prep)

    out = scaled_dot_prod_att_v1(query, key, value, prep)
    out = jax.block_until_ready(out)

    ref = reference_attention(query, key, value, params,
                              num_heads=num_heads, d_k=d_k, d_v=d_v)
    assert out.shape == (B, T1, out_feats)
    assert jnp.allclose(out, ref, atol=1e-2, rtol=1e-2), "mismatch vs reference"

    print("KERNEL_OK")
</pallas_src>

<mosaic_0001>
module attributes {stable_mosaic.version = 11 : i64} {
  func.func @kernel(%arg0: i32, %arg1: memref<16x32xf32, #tpu.memory_space<vmem>>, %arg2: memref<16x32xf32, #tpu.memory_space<vmem>>, %arg3: memref<16x32xf32, #tpu.memory_space<vmem>>, %arg4: memref<32x128xbf16, #tpu.memory_space<vmem>>, %arg5: memref<1x128xf32, #tpu.memory_space<vmem>>, %arg6: memref<32x32xbf16, #tpu.memory_space<vmem>>, %arg7: memref<1x32xf32, #tpu.memory_space<vmem>>, %arg8: memref<32x32xbf16, #tpu.memory_space<vmem>>, %arg9: memref<1x32xf32, #tpu.memory_space<vmem>>, %arg10: memref<16x32xf32, #tpu.memory_space<vmem>>, %arg11: memref<8x32xf32, #tpu.memory_space<vmem>>) attributes {dimension_semantics = [#tpu.dimension_semantics<parallel>], iteration_bounds = array<i64: 1>, scalar_prefetch = 0 : i64, scratch_operands = 1 : i64, tpu.core_type = #tpu.core_type<tc>, window_params = [{transform_indices = @transform_0, window_bounds = array<i64: 16, 32>}, {transform_indices = @transform_1, window_bounds = array<i64: 16, 32>}, {transform_indices = @transform_2, window_bounds = array<i64: 16, 32>}, {pipeline_mode = #tpu.pipeline_mode<synchronous>, transform_indices = @transform_3, window_bounds = array<i64: 32, 128>}, {pipeline_mode = #tpu.pipeline_mode<synchronous>, transform_indices = @transform_4, window_bounds = array<i64: 1, 128>}, {pipeline_mode = #tpu.pipeline_mode<synchronous>, transform_indices = @transform_5, window_bounds = array<i64: 32, 32>}, {pipeline_mode = #tpu.pipeline_mode<synchronous>, transform_indices = @transform_6, window_bounds = array<i64: 1, 32>}, {pipeline_mode = #tpu.pipeline_mode<synchronous>, transform_indices = @transform_7, window_bounds = array<i64: 32, 32>}, {pipeline_mode = #tpu.pipeline_mode<synchronous>, transform_indices = @transform_8, window_bounds = array<i64: 1, 32>}, {transform_indices = @transform_9, window_bounds = array<i64: 16, 32>}]} {
    %c0 = arith.constant 0 : index
    %c0_0 = arith.constant 0 : index
    %0 = vector.load %arg1[%c0, %c0_0] : memref<16x32xf32, #tpu.memory_space<vmem>>, vector<16x32xf32>
    %1 = arith.truncf %0 : vector<16x32xf32> to vector<16x32xbf16>
    %c0_1 = arith.constant 0 : index
    %c0_2 = arith.constant 0 : index
    %2 = vector.load %arg2[%c0_1, %c0_2] : memref<16x32xf32, #tpu.memory_space<vmem>>, vector<16x32xf32>
    %3 = arith.truncf %2 : vector<16x32xf32> to vector<16x32xbf16>
    %c0_3 = arith.constant 0 : index
    %c0_4 = arith.constant 0 : index
    %4 = vector.load %arg3[%c0_3, %c0_4] : memref<16x32xf32, #tpu.memory_space<vmem>>, vector<16x32xf32>
    %5 = arith.truncf %4 : vector<16x32xf32> to vector<16x32xbf16>
    %c0_5 = arith.constant 0 : index
    %c0_6 = arith.constant 0 : index
    %6 = vector.load %arg4[%c0_5, %c0_6] : memref<32x128xbf16, #tpu.memory_space<vmem>>, vector<32x128xbf16>
    %cst = arith.constant dense<0.000000e+00> : vector<16x128xf32>
    %7 = tpu.matmul %1, %6, %cst {dimension_numbers = #tpu.dot_dimension_numbers<[1], [0], [0], [1], [0, 0, 1, 1], [], []>} : vector<16x32xbf16>, vector<32x128xbf16>, vector<16x128xf32> -> vector<16x128xf32>
    %c0_7 = arith.constant 0 : index
    %c0_8 = arith.constant 0 : index
    %8 = vector.load %arg5[%c0_7, %c0_8] : memref<1x128xf32, #tpu.memory_space<vmem>>, vector<1x128xf32>
    %9 = vector.broadcast %8 : vector<1x128xf32> to vector<16x128xf32>
    %10 = arith.addf %7, %9 : vector<16x128xf32>
    %11 = arith.truncf %10 : vector<16x128xf32> to vector<16x128xbf16>
    %c0_9 = arith.constant 0 : index
    %c0_10 = arith.constant 0 : index
    %12 = vector.load %arg6[%c0_9, %c0_10] : memref<32x32xbf16, #tpu.memory_space<vmem>>, vector<32x32xbf16>
    %cst_11 = arith.constant dense<0.000000e+00> : vector<16x32xf32>
    %13 = tpu.matmul %5, %12, %cst_11 {dimension_numbers = #tpu.dot_dimension_numbers<[1], [0], [0], [1], [0, 0, 1, 1], [], []>} : vector<16x32xbf16>, vector<32x32xbf16>, vector<16x32xf32> -> vector<16x32xf32>
    %c0_12 = arith.constant 0 : index
    %c0_13 = arith.constant 0 : index
    %14 = vector.load %arg7[%c0_12, %c0_13] : memref<1x32xf32, #tpu.memory_space<vmem>>, vector<1x32xf32>
    %15 = vector.broadcast %14 : vector<1x32xf32> to vector<16x32xf32>
    %16 = arith.addf %13, %15 : vector<16x32xf32>
    %17 = arith.truncf %16 : vector<16x32xf32> to vector<16x32xbf16>
    %c0_14 = arith.constant 0 : index
    %c0_15 = arith.constant 0 : index
    %18 = vector.load %arg8[%c0_14, %c0_15] : memref<32x32xbf16, #tpu.memory_space<vmem>>, vector<32x32xbf16>
    %c0_16 = arith.constant 0 : index
    %c0_17 = arith.constant 0 : index
    %19 = vector.load %arg9[%c0_16, %c0_17] : memref<1x32xf32, #tpu.memory_space<vmem>>, vector<1x32xf32>
    %20 = vector.extract_strided_slice %3 {offsets = [0, 0], sizes = [8, 32], strides = [1, 1]} : vector<16x32xbf16> to vector<8x32xbf16>
    %21 = vector.extract_strided_slice %11 {offsets = [0, 0], sizes = [8, 32], strides = [1, 1]} : vector<16x128xbf16> to vector<8x32xbf16>
    %cst_18 = arith.constant dense<0.000000e+00> : vector<8x8xf32>
    %22 = tpu.matmul %21, %20, %cst_18 {dimension_numbers = #tpu.dot_dimension_numbers<[1], [1], [0], [0], [0, 0, 1, 0], [], []>} : vector<8x32xbf16>, vector<8x32xbf16>, vector<8x8xf32> -> vector<8x8xf32>
    %cst_19 = arith.constant dense<0xFF800000> : vector<8xf32>
    %23 = vector.multi_reduction <maximumf>, %22, %cst_19 [1] : vector<8x8xf32> to vector<8xf32>
    %24 = vector.shape_cast %23 : vector<8xf32> to vector<8x1xf32>
    %25 = vector.broadcast %24 : vector<8x1xf32> to vector<8x8xf32>
    %26 = arith.subf %22, %25 : vector<8x8xf32>
    %27 = math.exp %26 : vector<8x8xf32>
    %cst_20 = arith.constant dense<0.000000e+00> : vector<8xf32>
    %28 = vector.multi_reduction <add>, %27, %cst_20 [1] : vector<8x8xf32> to vector<8xf32>
    %29 = vector.shape_cast %28 : vector<8xf32> to vector<8x1xf32>
    %30 = tpu.reciprocal %29 {approx = true} : vector<8x1xf32> -> vector<8x1xf32>
    %31 = vector.broadcast %30 : vector<8x1xf32> to vector<8x8xf32>
    %32 = arith.mulf %27, %31 : vector<8x8xf32>
    %33 = vector.extract_strided_slice %17 {offsets = [0, 0], sizes = [8, 8], strides = [1, 1]} : vector<16x32xbf16> to vector<8x8xbf16>
    %34 = arith.truncf %32 : vector<8x8xf32> to vector<8x8xbf16>
    %cst_21 = arith.constant dense<0.000000e+00> : vector<8x8xf32>
    %35 = tpu.matmul %34, %33, %cst_21 {dimension_numbers = #tpu.dot_dimension_numbers<[1], [0], [0], [1], [0, 0, 1, 1], [], []>} : vector<8x8xbf16>, vector<8x8xbf16>, vector<8x8xf32> -> vector<8x8xf32>
    %c0_22 = arith.constant 0 : index
    %c0_23 = arith.constant 0 : index
    %36 = vector.load %arg11[%c0_22, %c0_23] : memref<8x32xf32, #tpu.memory_space<vmem>>, vector<8x8xf32>
    tpu.vector_store %arg11[%c0_22, %c0_23], %35 {strides = array<i32>} : memref<8x32xf32, #tpu.memory_space<vmem>>, vector<8x8xf32>,
    %37 = vector.extract_strided_slice %11 {offsets = [0, 32], sizes = [8, 32], strides = [1, 1]} : vector<16x128xbf16> to vector<8x32xbf16>
    %cst_24 = arith.constant dense<0.000000e+00> : vector<8x8xf32>
    %38 = tpu.matmul %37, %20, %cst_24 {dimension_numbers = #tpu.dot_dimension_numbers<[1], [1], [0], [0], [0, 0, 1, 0], [], []>} : vector<8x32xbf16>, vector<8x32xbf16>, vector<8x8xf32> -> vector<8x8xf32>
    %cst_25 = arith.constant dense<0xFF800000> : vector<8xf32>
    %39 = vector.multi_reduction <maximumf>, %38, %cst_25 [1] : vector<8x8xf32> to vector<8xf32>
    %40 = vector.shape_cast %39 : vector<8xf32> to vector<8x1xf32>
    %41 = vector.broadcast %40 : vector<8x1xf32> to vector<8x8xf32>
    %42 = arith.subf %38, %41 : vector<8x8xf32>
    %43 = math.exp %42 : vector<8x8xf32>
    %cst_26 = arith.constant dense<0.000000e+00> : vector<8xf32>
    %44 = vector.multi_reduction <add>, %43, %cst_26 [1] : vector<8x8xf32> to vector<8xf32>
    %45 = vector.shape_cast %44 : vector<8xf32> to vector<8x1xf32>
    %46 = tpu.reciprocal %45 {approx = true} : vector<8x1xf32> -> vector<8x1xf32>
    %47 = vector.broadcast %46 : vector<8x1xf32> to vector<8x8xf32>
    %48 = arith.mulf %43, %47 : vector<8x8xf32>
    %49 = vector.extract_strided_slice %17 {offsets = [0, 8], sizes = [8, 8], strides = [1, 1]} : vector<16x32xbf16> to vector<8x8xbf16>
    %50 = arith.truncf %48 : vector<8x8xf32> to vector<8x8xbf16>
    %cst_27 = arith.constant dense<0.000000e+00> : vector<8x8xf32>
    %51 = tpu.matmul %50, %49, %cst_27 {dimension_numbers = #tpu.dot_dimension_numbers<[1], [0], [0], [1], [0, 0, 1, 1], [], []>} : vector<8x8xbf16>, vector<8x8xbf16>, vector<8x8xf32> -> vector<8x8xf32>
    %c0_28 = arith.constant 0 : index
    %c8 = arith.constant 8 : index
    %52 = vector.load %arg11[%c0_28, %c8] : memref<8x32xf32, #tpu.memory_space<vmem>>, vector<8x8xf32>
    tpu.vector_store %arg11[%c0_28, %c8], %51 {strides = array<i32>} : memref<8x32xf32, #tpu.memory_space<vmem>>, vector<8x8xf32>,
    %53 = vector.extract_strided_slice %11 {offsets = [0, 64], sizes = [8, 32], strides = [1, 1]} : vector<16x128xbf16> to vector<8x32xbf16>
    %cst_29 = arith.constant dense<0.000000e+00> : vector<8x8xf32>
    %54 = tpu.matmul %53, %20, %cst_29 {dimension_numbers = #tpu.dot_dimension_numbers<[1], [1], [0], [0], [0, 0, 1, 0], [], []>} : vector<8x32xbf16>, vector<8x32xbf16>, vector<8x8xf32> -> vector<8x8xf32>
    %cst_30 = arith.constant dense<0xFF800000> : vector<8xf32>
    %55 = vector.multi_reduction <maximumf>, %54, %cst_30 [1] : vector<8x8xf32> to vector<8xf32>
    %56 = vector.shape_cast %55 : vector<8xf32> to vector<8x1xf32>
    %57 = vector.broadcast %56 : vector<8x1xf32> to vector<8x8xf32>
    %58 = arith.subf %54, %57 : vector<8x8xf32>
    %59 = math.exp %58 : vector<8x8xf32>
    %cst_31 = arith.constant dense<0.000000e+00> : vector<8xf32>
    %60 = vector.multi_reduction <add>, %59, %cst_31 [1] : vector<8x8xf32> to vector<8xf32>
    %61 = vector.shape_cast %60 : vector<8xf32> to vector<8x1xf32>
    %62 = tpu.reciprocal %61 {approx = true} : vector<8x1xf32> -> vector<8x1xf32>
    %63 = vector.broadcast %62 : vector<8x1xf32> to vector<8x8xf32>
    %64 = arith.mulf %59, %63 : vector<8x8xf32>
    %65 = vector.extract_strided_slice %17 {offsets = [0, 16], sizes = [8, 8], strides = [1, 1]} : vector<16x32xbf16> to vector<8x8xbf16>
    %66 = arith.truncf %64 : vector<8x8xf32> to vector<8x8xbf16>
    %cst_32 = arith.constant dense<0.000000e+00> : vector<8x8xf32>
    %67 = tpu.matmul %66, %65, %cst_32 {dimension_numbers = #tpu.dot_dimension_numbers<[1], [0], [0], [1], [0, 0, 1, 1], [], []>} : vector<8x8xbf16>, vector<8x8xbf16>, vector<8x8xf32> -> vector<8x8xf32>
    %c0_33 = arith.constant 0 : index
    %c16 = arith.constant 16 : index
    %68 = vector.load %arg11[%c0_33, %c16] : memref<8x32xf32, #tpu.memory_space<vmem>>, vector<8x8xf32>
    tpu.vector_store %arg11[%c0_33, %c16], %67 {strides = array<i32>} : memref<8x32xf32, #tpu.memory_space<vmem>>, vector<8x8xf32>,
    %69 = vector.extract_strided_slice %11 {offsets = [0, 96], sizes = [8, 32], strides = [1, 1]} : vector<16x128xbf16> to vector<8x32xbf16>
    %cst_34 = arith.constant dense<0.000000e+00> : vector<8x8xf32>
    %70 = tpu.matmul %69, %20, %cst_34 {dimension_numbers = #tpu.dot_dimension_numbers<[1], [1], [0], [0], [0, 0, 1, 0], [], []>} : vector<8x32xbf16>, vector<8x32xbf16>, vector<8x8xf32> -> vector<8x8xf32>
    %cst_35 = arith.constant dense<0xFF800000> : vector<8xf32>
    %71 = vector.multi_reduction <maximumf>, %70, %cst_35 [1] : vector<8x8xf32> to vector<8xf32>
    %72 = vector.shape_cast %71 : vector<8xf32> to vector<8x1xf32>
    %73 = vector.broadcast %72 : vector<8x1xf32> to vector<8x8xf32>
    %74 = arith.subf %70, %73 : vector<8x8xf32>
    %75 = math.exp %74 : vector<8x8xf32>
    %cst_36 = arith.constant dense<0.000000e+00> : vector<8xf32>
    %76 = vector.multi_reduction <add>, %75, %cst_36 [1] : vector<8x8xf32> to vector<8xf32>
    %77 = vector.shape_cast %76 : vector<8xf32> to vector<8x1xf32>
    %78 = tpu.reciprocal %77 {approx = true} : vector<8x1xf32> -> vector<8x1xf32>
    %79 = vector.broadcast %78 : vector<8x1xf32> to vector<8x8xf32>
    %80 = arith.mulf %75, %79 : vector<8x8xf32>
    %81 = vector.extract_strided_slice %17 {offsets = [0, 24], sizes = [8, 8], strides = [1, 1]} : vector<16x32xbf16> to vector<8x8xbf16>
    %82 = arith.truncf %80 : vector<8x8xf32> to vector<8x8xbf16>
    %cst_37 = arith.constant dense<0.000000e+00> : vector<8x8xf32>
    %83 = tpu.matmul %82, %81, %cst_37 {dimension_numbers = #tpu.dot_dimension_numbers<[1], [0], [0], [1], [0, 0, 1, 1], [], []>} : vector<8x8xbf16>, vector<8x8xbf16>, vector<8x8xf32> -> vector<8x8xf32>
    %c0_38 = arith.constant 0 : index
    %c24 = arith.constant 24 : index
    %84 = vector.load %arg11[%c0_38, %c24] : memref<8x32xf32, #tpu.memory_space<vmem>>, vector<8x8xf32>
    tpu.vector_store %arg11[%c0_38, %c24], %83 {strides = array<i32>} : memref<8x32xf32, #tpu.memory_space<vmem>>, vector<8x8xf32>,
    %c0_39 = arith.constant 0 : index
    %c0_40 = arith.constant 0 : index
    %85 = vector.load %arg11[%c0_39, %c0_40] : memref<8x32xf32, #tpu.memory_space<vmem>>, vector<8x32xf32>
    %86 = arith.truncf %85 : vector<8x32xf32> to vector<8x32xbf16>
    %cst_41 = arith.constant dense<0.000000e+00> : vector<8x32xf32>
    %87 = tpu.matmul %86, %18, %cst_41 {dimension_numbers = #tpu.dot_dimension_numbers<[1], [0], [0], [1], [0, 0, 1, 1], [], []>} : vector<8x32xbf16>, vector<32x32xbf16>, vector<8x32xf32> -> vector<8x32xf32>
    %88 = vector.broadcast %19 : vector<1x32xf32> to vector<8x32xf32>
    %89 = arith.addf %87, %88 : vector<8x32xf32>
    %c0_42 = arith.constant 0 : index
    %c0_43 = arith.constant 0 : index
    %90 = vector.load %arg10[%c0_42, %c0_43] : memref<16x32xf32, #tpu.memory_space<vmem>>, vector<8x32xf32>
    tpu.vector_store %arg10[%c0_42, %c0_43], %89 {strides = array<i32>} : memref<16x32xf32, #tpu.memory_space<vmem>>, vector<8x32xf32>,
    %91 = vector.extract_strided_slice %3 {offsets = [8, 0], sizes = [8, 32], strides = [1, 1]} : vector<16x32xbf16> to vector<8x32xbf16>
    %92 = vector.extract_strided_slice %11 {offsets = [8, 0], sizes = [8, 32], strides = [1, 1]} : vector<16x128xbf16> to vector<8x32xbf16>
    %cst_44 = arith.constant dense<0.000000e+00> : vector<8x8xf32>
    %93 = tpu.matmul %92, %91, %cst_44 {dimension_numbers = #tpu.dot_dimension_numbers<[1], [1], [0], [0], [0, 0, 1, 0], [], []>} : vector<8x32xbf16>, vector<8x32xbf16>, vector<8x8xf32> -> vector<8x8xf32>
    %cst_45 = arith.constant dense<0xFF800000> : vector<8xf32>
    %94 = vector.multi_reduction <maximumf>, %93, %cst_45 [1] : vector<8x8xf32> to vector<8xf32>
    %95 = vector.shape_cast %94 : vector<8xf32> to vector<8x1xf32>
    %96 = vector.broadcast %95 : vector<8x1xf32> to vector<8x8xf32>
    %97 = arith.subf %93, %96 : vector<8x8xf32>
    %98 = math.exp %97 : vector<8x8xf32>
    %cst_46 = arith.constant dense<0.000000e+00> : vector<8xf32>
    %99 = vector.multi_reduction <add>, %98, %cst_46 [1] : vector<8x8xf32> to vector<8xf32>
    %100 = vector.shape_cast %99 : vector<8xf32> to vector<8x1xf32>
    %101 = tpu.reciprocal %100 {approx = true} : vector<8x1xf32> -> vector<8x1xf32>
    %102 = vector.broadcast %101 : vector<8x1xf32> to vector<8x8xf32>
    %103 = arith.mulf %98, %102 : vector<8x8xf32>
    %104 = vector.extract_strided_slice %17 {offsets = [8, 0], sizes = [8, 8], strides = [1, 1]} : vector<16x32xbf16> to vector<8x8xbf16>
    %105 = arith.truncf %103 : vector<8x8xf32> to vector<8x8xbf16>
    %cst_47 = arith.constant dense<0.000000e+00> : vector<8x8xf32>
    %106 = tpu.matmul %105, %104, %cst_47 {dimension_numbers = #tpu.dot_dimension_numbers<[1], [0], [0], [1], [0, 0, 1, 1], [], []>} : vector<8x8xbf16>, vector<8x8xbf16>, vector<8x8xf32> -> vector<8x8xf32>
    %c0_48 = arith.constant 0 : index
    %c0_49 = arith.constant 0 : index
    %107 = vector.load %arg11[%c0_48, %c0_49] : memref<8x32xf32, #tpu.memory_space<vmem>>, vector<8x8xf32>
    tpu.vector_store %arg11[%c0_48, %c0_49], %106 {strides = array<i32>} : memref<8x32xf32, #tpu.memory_space<vmem>>, vector<8x8xf32>,
    %108 = vector.extract_strided_slice %11 {offsets = [8, 32], sizes = [8, 32], strides = [1, 1]} : vector<16x128xbf16> to vector<8x32xbf16>
    %cst_50 = arith.constant dense<0.000000e+00> : vector<8x8xf32>
    %109 = tpu.matmul %108, %91, %cst_50 {dimension_numbers = #tpu.dot_dimension_numbers<[1], [1], [0], [0], [0, 0, 1, 0], [], []>} : vector<8x32xbf16>, vector<8x32xbf16>, vector<8x8xf32> -> vector<8x8xf32>
    %cst_51 = arith.constant dense<0xFF800000> : vector<8xf32>
    %110 = vector.multi_reduction <maximumf>, %109, %cst_51 [1] : vector<8x8xf32> to vector<8xf32>
    %111 = vector.shape_cast %110 : vector<8xf32> to vector<8x1xf32>
    %112 = vector.broadcast %111 : vector<8x1xf32> to vector<8x8xf32>
    %113 = arith.subf %109, %112 : vector<8x8xf32>
    %114 = math.exp %113 : vector<8x8xf32>
    %cst_52 = arith.constant dense<0.000000e+00> : vector<8xf32>
    %115 = vector.multi_reduction <add>, %114, %cst_52 [1] : vector<8x8xf32> to vector<8xf32>
    %116 = vector.shape_cast %115 : vector<8xf32> to vector<8x1xf32>
    %117 = tpu.reciprocal %116 {approx = true} : vector<8x1xf32> -> vector<8x1xf32>
    %118 = vector.broadcast %117 : vector<8x1xf32> to vector<8x8xf32>
    %119 = arith.mulf %114, %118 : vector<8x8xf32>
    %120 = vector.extract_strided_slice %17 {offsets = [8, 8], sizes = [8, 8], strides = [1, 1]} : vector<16x32xbf16> to vector<8x8xbf16>
    %121 = arith.truncf %119 : vector<8x8xf32> to vector<8x8xbf16>
    %cst_53 = arith.constant dense<0.000000e+00> : vector<8x8xf32>
    %122 = tpu.matmul %121, %120, %cst_53 {dimension_numbers = #tpu.dot_dimension_numbers<[1], [0], [0], [1], [0, 0, 1, 1], [], []>} : vector<8x8xbf16>, vector<8x8xbf16>, vector<8x8xf32> -> vector<8x8xf32>
    %c0_54 = arith.constant 0 : index
    %c8_55 = arith.constant 8 : index
    %123 = vector.load %arg11[%c0_54, %c8_55] : memref<8x32xf32, #tpu.memory_space<vmem>>, vector<8x8xf32>
    tpu.vector_store %arg11[%c0_54, %c8_55], %122 {strides = array<i32>} : memref<8x32xf32, #tpu.memory_space<vmem>>, vector<8x8xf32>,
    %124 = vector.extract_strided_slice %11 {offsets = [8, 64], sizes = [8, 32], strides = [1, 1]} : vector<16x128xbf16> to vector<8x32xbf16>
    %cst_56 = arith.constant dense<0.000000e+00> : vector<8x8xf32>
    %125 = tpu.matmul %124, %91, %cst_56 {dimension_numbers = #tpu.dot_dimension_numbers<[1], [1], [0], [0], [0, 0, 1, 0], [], []>} : vector<8x32xbf16>, vector<8x32xbf16>, vector<8x8xf32> -> vector<8x8xf32>
    %cst_57 = arith.constant dense<0xFF800000> : vector<8xf32>
    %126 = vector.multi_reduction <maximumf>, %125, %cst_57 [1] : vector<8x8xf32> to vector<8xf32>
    %127 = vector.shape_cast %126 : vector<8xf32> to vector<8x1xf32>
    %128 = vector.broadcast %127 : vector<8x1xf32> to vector<8x8xf32>
    %129 = arith.subf %125, %128 : vector<8x8xf32>
    %130 = math.exp %129 : vector<8x8xf32>
    %cst_58 = arith.constant dense<0.000000e+00> : vector<8xf32>
    %131 = vector.multi_reduction <add>, %130, %cst_58 [1] : vector<8x8xf32> to vector<8xf32>
    %132 = vector.shape_cast %131 : vector<8xf32> to vector<8x1xf32>
    %133 = tpu.reciprocal %132 {approx = true} : vector<8x1xf32> -> vector<8x1xf32>
    %134 = vector.broadcast %133 : vector<8x1xf32> to vector<8x8xf32>
    %135 = arith.mulf %130, %134 : vector<8x8xf32>
    %136 = vector.extract_strided_slice %17 {offsets = [8, 16], sizes = [8, 8], strides = [1, 1]} : vector<16x32xbf16> to vector<8x8xbf16>
    %137 = arith.truncf %135 : vector<8x8xf32> to vector<8x8xbf16>
    %cst_59 = arith.constant dense<0.000000e+00> : vector<8x8xf32>
    %138 = tpu.matmul %137, %136, %cst_59 {dimension_numbers = #tpu.dot_dimension_numbers<[1], [0], [0], [1], [0, 0, 1, 1], [], []>} : vector<8x8xbf16>, vector<8x8xbf16>, vector<8x8xf32> -> vector<8x8xf32>
    %c0_60 = arith.constant 0 : index
    %c16_61 = arith.constant 16 : index
    %139 = vector.load %arg11[%c0_60, %c16_61] : memref<8x32xf32, #tpu.memory_space<vmem>>, vector<8x8xf32>
    tpu.vector_store %arg11[%c0_60, %c16_61], %138 {strides = array<i32>} : memref<8x32xf32, #tpu.memory_space<vmem>>, vector<8x8xf32>,
    %140 = vector.extract_strided_slice %11 {offsets = [8, 96], sizes = [8, 32], strides = [1, 1]} : vector<16x128xbf16> to vector<8x32xbf16>
    %cst_62 = arith.constant dense<0.000000e+00> : vector<8x8xf32>
    %141 = tpu.matmul %140, %91, %cst_62 {dimension_numbers = #tpu.dot_dimension_numbers<[1], [1], [0], [0], [0, 0, 1, 0], [], []>} : vector<8x32xbf16>, vector<8x32xbf16>, vector<8x8xf32> -> vector<8x8xf32>
    %cst_63 = arith.constant dense<0xFF800000> : vector<8xf32>
    %142 = vector.multi_reduction <maximumf>, %141, %cst_63 [1] : vector<8x8xf32> to vector<8xf32>
    %143 = vector.shape_cast %142 : vector<8xf32> to vector<8x1xf32>
    %144 = vector.broadcast %143 : vector<8x1xf32> to vector<8x8xf32>
    %145 = arith.subf %141, %144 : vector<8x8xf32>
    %146 = math.exp %145 : vector<8x8xf32>
    %cst_64 = arith.constant dense<0.000000e+00> : vector<8xf32>
    %147 = vector.multi_reduction <add>, %146, %cst_64 [1] : vector<8x8xf32> to vector<8xf32>
    %148 = vector.shape_cast %147 : vector<8xf32> to vector<8x1xf32>
    %149 = tpu.reciprocal %148 {approx = true} : vector<8x1xf32> -> vector<8x1xf32>
    %150 = vector.broadcast %149 : vector<8x1xf32> to vector<8x8xf32>
    %151 = arith.mulf %146, %150 : vector<8x8xf32>
    %152 = vector.extract_strided_slice %17 {offsets = [8, 24], sizes = [8, 8], strides = [1, 1]} : vector<16x32xbf16> to vector<8x8xbf16>
    %153 = arith.truncf %151 : vector<8x8xf32> to vector<8x8xbf16>
    %cst_65 = arith.constant dense<0.000000e+00> : vector<8x8xf32>
    %154 = tpu.matmul %153, %152, %cst_65 {dimension_numbers = #tpu.dot_dimension_numbers<[1], [0], [0], [1], [0, 0, 1, 1], [], []>} : vector<8x8xbf16>, vector<8x8xbf16>, vector<8x8xf32> -> vector<8x8xf32>
    %c0_66 = arith.constant 0 : index
    %c24_67 = arith.constant 24 : index
    %155 = vector.load %arg11[%c0_66, %c24_67] : memref<8x32xf32, #tpu.memory_space<vmem>>, vector<8x8xf32>
    tpu.vector_store %arg11[%c0_66, %c24_67], %154 {strides = array<i32>} : memref<8x32xf32, #tpu.memory_space<vmem>>, vector<8x8xf32>,
    %c0_68 = arith.constant 0 : index
    %c0_69 = arith.constant 0 : index
    %156 = vector.load %arg11[%c0_68, %c0_69] : memref<8x32xf32, #tpu.memory_space<vmem>>, vector<8x32xf32>
    %157 = arith.truncf %156 : vector<8x32xf32> to vector<8x32xbf16>
    %cst_70 = arith.constant dense<0.000000e+00> : vector<8x32xf32>
    %158 = tpu.matmul %157, %18, %cst_70 {dimension_numbers = #tpu.dot_dimension_numbers<[1], [0], [0], [1], [0, 0, 1, 1], [], []>} : vector<8x32xbf16>, vector<32x32xbf16>, vector<8x32xf32> -> vector<8x32xf32>
    %159 = vector.broadcast %19 : vector<1x32xf32> to vector<8x32xf32>
    %160 = arith.addf %158, %159 : vector<8x32xf32>
    %c8_71 = arith.constant 8 : index
    %c0_72 = arith.constant 0 : index
    %161 = vector.load %arg10[%c8_71, %c0_72] : memref<16x32xf32, #tpu.memory_space<vmem>>, vector<8x32xf32>
    tpu.vector_store %arg10[%c8_71, %c0_72], %160 {strides = array<i32>} : memref<16x32xf32, #tpu.memory_space<vmem>>, vector<8x32xf32>,
    return
  }
  func.func @transform_0(%arg0: i32) -> (i32, i32) {
    %c0_i32 = arith.constant 0 : i32
    %c0_i32_0 = arith.constant 0 : i32
    return %arg0, %c0_i32 : i32, i32
  }
  func.func @transform_1(%arg0: i32) -> (i32, i32) {
    %c0_i32 = arith.constant 0 : i32
    %c0_i32_0 = arith.constant 0 : i32
    return %arg0, %c0_i32 : i32, i32
  }
  func.func @transform_2(%arg0: i32) -> (i32, i32) {
    %c0_i32 = arith.constant 0 : i32
    %c0_i32_0 = arith.constant 0 : i32
    return %arg0, %c0_i32 : i32, i32
  }
  func.func @transform_3(%arg0: i32) -> (i32, i32) {
    %c0_i32 = arith.constant 0 : i32
    %c0_i32_0 = arith.constant 0 : i32
    %c0_i32_1 = arith.constant 0 : i32
    return %c0_i32, %c0_i32_0 : i32, i32
  }
  func.func @transform_4(%arg0: i32) -> (i32, i32) {
    %c0_i32 = arith.constant 0 : i32
    %c0_i32_0 = arith.constant 0 : i32
    %c0_i32_1 = arith.constant 0 : i32
    return %c0_i32, %c0_i32_0 : i32, i32
  }
  func.func @transform_5(%arg0: i32) -> (i32, i32) {
    %c0_i32 = arith.constant 0 : i32
    %c0_i32_0 = arith.constant 0 : i32
    %c0_i32_1 = arith.constant 0 : i32
    return %c0_i32, %c0_i32_0 : i32, i32
  }
  func.func @transform_6(%arg0: i32) -> (i32, i32) {
    %c0_i32 = arith.constant 0 : i32
    %c0_i32_0 = arith.constant 0 : i32
    %c0_i32_1 = arith.constant 0 : i32
    return %c0_i32, %c0_i32_0 : i32, i32
  }
  func.func @transform_7(%arg0: i32) -> (i32, i32) {
    %c0_i32 = arith.constant 0 : i32
    %c0_i32_0 = arith.constant 0 : i32
    %c0_i32_1 = arith.constant 0 : i32
    return %c0_i32, %c0_i32_0 : i32, i32
  }
  func.func @transform_8(%arg0: i32) -> (i32, i32) {
    %c0_i32 = arith.constant 0 : i32
    %c0_i32_0 = arith.constant 0 : i32
    %c0_i32_1 = arith.constant 0 : i32
    return %c0_i32, %c0_i32_0 : i32, i32
  }
  func.func @transform_9(%arg0: i32) -> (i32, i32) {
    %c0_i32 = arith.constant 0 : i32
    %c0_i32_0 = arith.constant 0 : i32
    return %arg0, %c0_i32 : i32, i32
  }
}

</mosaic_0001>

<bundles_post_ra>
// kernel: scaled_dot_prod_att_v1.1
= control target key start
LH: loop header
LB: loop body
LE: loop exit
PB: predicated region body
PF: predicated region fallthrough
CT: control target
= control target key end

     0   :  { %14 = vsyncpa [#allocation4], 0  ;;  %s1237_s0 = inlined_call_operand.hbm [shape: f32[16,32], index: 0, kind: input, shape index: {}]   ;;  %s1238_s1 = inlined_call_operand.hbm [shape: f32[16,32], index: 1, kind: input, shape index: {}]   ;;  %s1239_s2 = inlined_call_operand.hbm [shape: f32[16,32], index: 2, kind: input, shape index: {}]   ;;  %s1240_s3 = inlined_call_operand.hbm [shape: bf16[32,128], index: 3, kind: input, shape index: {}]   ;;  %s1241_s4 = inlined_call_operand.vmem [shape: f32[1,128], index: 4, kind: input, shape index: {}]   ;;  %s1242_s5 = inlined_call_operand.hbm [shape: bf16[32,32], index: 5, kind: input, shape index: {}]   ;;  %s1243_s6 = inlined_call_operand.vmem [shape: f32[1,32], index: 6, kind: input, shape index: {}]   ;;  %s1244_s7 = inlined_call_operand.hbm [shape: bf16[32,32], index: 7, kind: input, shape index: {}]   ;;  %s1245_s8 = inlined_call_operand.vmem [shape: f32[1,32], index: 8, kind: input, shape index: {}]   ;;  %s1246_s9 = inlined_call_operand.hbm [shape: f32[16,32], index: 9, kind: output, shape index: {}]  }
   0x1   :  { %15 = vsyncpa [#allocation7], 0 }
   0x2   :  { %16 = vsyncpa [#allocation10], 0 }
   0x3   :  { %17 = vsyncpa [#allocation13], 0 }
   0x4   :  { %18 = vsyncpa [#allocation5], 0  ;;  %s36_s11 = sshll.u32 %s1238_s1, 4  ;;  %s1033_s12 = smov [#allocation6]   ;;  %s37_s11 = int_to_ptr.hbm [resolvable:$true] %s36_s11 }
   0x5   :  { %s38_s13 = sshll.u32 %s1033_s12, 4  ;;  %s62_s16 = sshll.u32 %s1240_s3, 4  ;;  %s39_s13 = int_to_ptr.vmem [resolvable:$true] %s38_s13  ;;  %s63_s16 = int_to_ptr.hbm [resolvable:$true] %s62_s16 }
   0x6   :  { %s1034_s17 = smov 128   ;;  %s1035_s18 = smov 8  }
   0x7   :  { %44 = dma.hbm_to_vmem [thread:$0]  %s37_s11, 256, %s39_s13, [#allocation7], %s1034_s17, %s1034_s17, %s1035_s18  }
   0x8   :  { %s1036_s19 = smov [#allocation9]   ;;  %s1037_s21 = smov 64  }
   0x9   :  { %s64_s20 = sshll.u32 %s1036_s19, 4  ;;  %s1038_s1 = smov 4   ;;  %s65_s20 = int_to_ptr.vmem [resolvable:$true] %s64_s20 }
   0xa   :  { %70 = dma.hbm_to_vmem [thread:$0]  %s63_s16, 256, %s65_s20, [#allocation10], %s1037_s21, %s1037_s21, %s1038_s1  }
   0xb   :  { %s23_s24 = sshll.u32 %s1237_s0, 4  ;;  %s1039_s3 = smov [#allocation3]   ;;  %s24_s24 = int_to_ptr.hbm [resolvable:$true] %s23_s24 }
   0xc   :  { %s25_s25 = sshll.u32 %s1039_s3, 4  ;;  %s49_s28 = sshll.u32 %s1239_s2, 4  ;;  %s26_s25 = int_to_ptr.vmem [resolvable:$true] %s25_s25  ;;  %s50_s28 = int_to_ptr.hbm [resolvable:$true] %s49_s28 }
   0xd   :  { %31 = dma.hbm_to_vmem [thread:$0]  %s24_s24, 256, %s26_s25, [#allocation4], %s1034_s17, %s1034_s17, %s1035_s18  }
   0xe   :  { %s1040_s29 = smov [#allocation8]   ;;  %s77_s12 = sshll.u32 %s1242_s5, 4  ;;  %s78_s12 = int_to_ptr.hbm [resolvable:$true] %s77_s12 }
   0xf   :  { %s51_s30 = sshll.u32 %s1040_s29, 4  ;;  %s92_s2 = sshll.u32 %s1244_s7, 4  ;;  %s52_s30 = int_to_ptr.vmem [resolvable:$true] %s51_s30  ;;  %s93_s2 = int_to_ptr.hbm [resolvable:$true] %s92_s2 }
  0x10   :  { %57 = dma.hbm_to_vmem [thread:$0]  %s50_s28, 256, %s52_s30, [#allocation7], %s1034_s17, %s1034_s17, %s1035_s18  }
  0x11   :  { %s1041_s14 = smov [#allocation11]   ;;  %s1042_s16 = smov [#allocation12]  }
  0x12   :  { %s79_s15 = sshll.u32 %s1041_s14, 4  ;;  %s94_s19 = sshll.u32 %s1042_s16, 4  ;;  %s80_s15 = int_to_ptr.vmem [resolvable:$true] %s79_s15  ;;  %s95_s19 = int_to_ptr.vmem [resolvable:$true] %s94_s19 }
  0x13   :  { %85 = dma.hbm_to_vmem [thread:$0]  %s78_s12, 256, %s80_s15, [#allocation10], %s1037_s21, %s1037_s21, %s1038_s1  }
  0x14   :  { %100 = dma.hbm_to_vmem [thread:$0]  %s93_s2, 256, %s95_s19, [#allocation13], %s1037_s21, %s1037_s21, %s1038_s1  }
  0x15   :  { %1023 = dma.done.wait [#allocation4], 256  }
  0x16   :  { %1024 = vsyncadd [#allocation4], 4294967040 }
  0x17   :  { %1025 = dma.done.wait [#allocation7], 512  }
  0x18   :  { %1026 = vsyncadd [#allocation7], 4294966784 }
  0x19   :  { %1027 = dma.done.wait [#allocation10], 512  }
  0x1a   :  { %1028 = vsyncadd [#allocation10], 4294966784 }
  0x1b   :  { %1029 = dma.done.wait [#allocation13], 256  }
  0x1c   :  { %1030 = vsyncadd [#allocation13], 4294967040  ;;  %v797_v0 = vld [vmem:[#allocation9 + $0x8] sm:$0xff]  ;;  %v796_v1 = vld [vmem:[#allocation9] sm:$0xff]  ;;  %vm158_vm0 = vcmask 261120   ;;  %s1043_s20 = smov 32  }
  0x1d   :  { %v128_v2 = vld [vmem:[#allocation3] sm:$0xff]  ;;  %v131_v3 = vld [vmem:[#allocation6] sm:$0xff]  ;;  %168 = vmatpush.bf16.msra.mxu0 %v797_v0  ;;  %v129_v4 = vld [vmem:[#allocation3 + $0x8] sm:$0xff]  ;;  %s1044_s1 = smov 96   ;;  %vm241_vm1 = vcmask 64512   ;;  %vm257_vm2 = vcmask 1043456  }
  0x1e   :  { %v133_v5 = vpack.c.bf16 %v131_v3, %v131_v3  ;;  %v130_v7 = vpack.c.bf16 %v129_v4, %v128_v2  ;;  %v1142_v8 = vld [vmem:[%s1241_s4] ss:$0 sm:$0xff]  ;;  %v799_v14 = vld [vmem:[#allocation11 + $0x8] sm:$0xff]  ;;  %v798_v15 = vld [vmem:[#allocation11] sm:$0xff]  ;;  %s1046_s23 = smov 112   ;;  %s1047_s24 = smov 104  }
  0x1f   :  { %207 = vmatpush.bf16.msra.mxu1 %v799_v14  ;;  %v135_v16 = vld [vmem:[#allocation8] sm:$0xff]  ;;  %v136_v17 = vld [vmem:[#allocation8 + $0x8] sm:$0xff]  ;;  %v821_v34 = vld [vmem:[%s1243_s6] ss:$0 sm:$0xff]  ;;  %s1045_s6 = smov 120   ;;  %s1049_s3 = smov 16  }
  0x20   :  { %v1135_v6 = vsel %vm158_vm0, %v133_v5, 0  ;;  %v137_v18 = vpack.c.bf16 %v136_v17, %v135_v16  ;;  %vm336_vm3 = vcmask 130112   ;;  %vm393_vm4 = vcmask 195712   ;;  %s736_s30 = sshll.u32 %s1246_s9, 4  ;;  %s737_s30 = int_to_ptr.hbm [resolvable:$true] %s736_s30 }
  0x21   :  { %235 = vmatpush.bf16.xpose.msra.mxu2 %v1135_v6  ;;  %169 = vmatpush.bf16.msra.mxu0 %v796_v1  ;;  %vm450_vm5 = vcmask 261312  }
  0x23   :  { %208 = vmatpush.bf16.msra.mxu1 %v798_v15 }
  0x24   :  { %760 = vmatmul.msk.bf16.vlgmr.msra.gmra.mxu0 %vm158_vm0, %v130_v7  ;;  %v132_v7 = vld [vmem:[#allocation6 + $0x8] sm:$0xff] }
  0x26   :  { %769 = vmatmul.msk.bf16.vlgmr.msra.gmra.mxu1 %vm158_vm0, %v137_v18 }
  0x27   :  { %350 = vmatpush.bf16.xpose.msrb.mxu1 %v1135_v6 }
  0xa1   :  { %v171_v9 = vpop.f32.mrf.mxu0 }
  0xa2   :  { %v172_v10 = vadd.f32 %v1142_v8, %v171_v9 }
  0xa3   :  { %v210_v24 = vpop.f32.mrf.mxu1 }
  0xa4   :  { %v176_v11 = vpack.c.bf16 %v172_v10, %v172_v10  ;;  %v211_v35 = vadd.f32 %v821_v34, %v210_v24 }
  0xa6   :  { %v276_v12 = vunpack.c.l.b16 %v176_v11  ;;  %770 = vmatmul.msk.bf16.vlgmr.msra.gmra.mxu2 %vm158_vm0, %v176_v11  ;;  %v215_v36 = vpack.c.bf16 %v211_v35, %v211_v35  ;;  %v134_v11 = vpack.c.bf16 %v132_v7, %v132_v7 }
  0xa8   :  { %v277_v13 = vpack.c.b16 %v276_v12, %v276_v12  ;;  %v259_v37 = vsel %vm257_vm2, %v215_v36, 0  ;;  %v309_v50 = vunpack.c.l.b16 %v215_v36 }
  0xa9   :  { %268 = vmatpush.bf16.msra.mxu3 %v259_v37  ;;  %v173_v62 = vpop.f32.mrf.mxu0 }
  0xaa   :  { %395 = vrot.lane.b32.xlu2 %v277_v13, %s1043_s20  ;;  %278 = vrot.lane.b32.xlu1 %v277_v13, %s1044_s1  ;;  %v310_v51 = vpack.c.b16 %v309_v50, %v309_v50  ;;  %v174_v0 = vadd.f32 %v1142_v8, %v173_v62  ;;  %v490_v8 = vsel %vm158_vm0, %v134_v11, 0 }
  0xab   :  { %v212_v25 = vpop.f32.mrf.mxu1 }
  0xac   :  { %v213_v46 = vadd.f32 %v821_v34, %v212_v25  ;;  %v177_v1 = vpack.c.bf16 %v174_v0, %v174_v0 }
  0xad   :  { %290 = vmatpush.bf16.xpose.msrb.mxu3 %v1135_v6 }
  0xae   :  { %v1163_v48 = vpack.c.bf16 %v213_v46, %v213_v46  ;;  %v538_v3 = vunpack.c.l.b16 %v177_v1 }
  0xb0   :  { %v521_v49 = vsel %vm257_vm2, %v1163_v48, 0  ;;  %v539_v4 = vpack.c.b16 %v538_v3, %v538_v3 }
  0xb2   :  { %338 = vrot.lane.b32.xlu1 %v277_v13, %s1037_s21 }
 0x104   :  { %v396_v52 = vpop.permute.xlu2 %395 }
 0x11c   :  { %v279_v19 = vpop.permute.xlu1 %278 }
 0x124   :  { %v339_v20 = vpop.permute.xlu1 %338 }
 0x125   :  { %774 = vmatmul.msk.bf16.vlgmr.msrb.gmra.mxu1 %vm158_vm0, %v339_v20 }
 0x129   :  { %v237_v21 = vpop.f32.mrf.mxu2 }
 0x12a   :  { %v242_v22 = vsel %vm241_vm1, %v237_v21, -inf }
 0x12b   :  { %243 = vmax.xlane.f32.xlu0 %v242_v22 }
 0x131   :  { %v239_v23 = vpop.f32.mrf.mxu2 }
 0x19e   :  { %v244_v26 = vpop.xlane.xlu0 %243 }
 0x19f   :  { %v245_v27 = vsub.f32 %v237_v21, %v244_v26 }
 0x1a1   :  { %v246_v28 = vmul.f32 1.442695, %v245_v27 }
 0x1a2   :  { %v352_v29 = vpop.f32.mrf.mxu1 }
 0x1a3   :  { %823 = vpow2.f32 %v246_v28  ;;  %v356_v33 = vsel %vm241_vm1, %v352_v29, -inf }
 0x1a9   :  { %v824_v30 = vpop.eup %823 }
 0x1aa   :  { %v354_v31 = vpop.f32.mrf.mxu1  ;;  %v248_v32 = vsel %vm241_vm1, %v824_v30, 0.0 }
 0x1ab   :  { %249 = vadd.xlane.f32.xlu0 %v248_v32 }
 0x1b3   :  { %357 = vmax.xlane.f32.xlu0 %v356_v33 }
 0x21e   :  { %v250_v38 = vpop.xlane.xlu0 %249 }
 0x21f   :  { %825 = vrcp.f32 %v250_v38 }
 0x225   :  { %v826_v39 = vpop.eup %825 }
 0x226   :  { %v358_v40 = vpop.xlane.xlu0 %357  ;;  %v252_v41 = vmul.f32 %v826_v39, %v824_v30 }
 0x227   :  { %v359_v42 = vsub.f32 %v352_v29, %v358_v40 }
 0x228   :  { %v253_v43 = vpack.c.bf16 %v252_v41, %v252_v41 }
 0x229   :  { %v360_v44 = vmul.f32 1.442695, %v359_v42 }
 0x22a   :  { %771 = vmatmul.msk.bf16.vlgmr.msra.gmra.mxu3 %vm241_vm1, %v253_v43 }
 0x22b   :  { %827 = vpow2.f32 %v360_v44  ;;  %407 = vmatpush.bf16.xpose.msra.mxu3 %v1135_v6 }
 0x231   :  { %v828_v45 = vpop.eup %827 }
 0x232   :  { %v362_v47 = vsel %vm241_vm1, %v828_v45, 0.0 }
 0x233   :  { %363 = vadd.xlane.f32.xlu0 %v362_v47 }
 0x23a   :  { %772 = vmatmul.msk.bf16.vlgmr.msrb.gmra.mxu3 %vm158_vm0, %v279_v19 }
 0x23b   :  { %530 = vmatpush.bf16.msrb.mxu3 %v521_v49 }
 0x247   :  { %311 = vrot.lane.b32.xlu0 %v310_v51, %s1045_s6 }
 0x24a   :  { %776 = vmatmul.msk.bf16.vlgmr.msra.gmra.mxu3 %vm158_vm0, %v396_v52 }
 0x2a6   :  { %v364_v54 = vpop.xlane.xlu0 %363 }
 0x2a7   :  { %829 = vrcp.f32 %v364_v54  ;;  %v571_v54 = vunpack.c.l.b16 %v1163_v48  ;;  %v801_v48 = vld [vmem:[#allocation12 + $0x8] sm:$0xff] }
 0x2a8   :  { %478 = vmatpush.bf16.msra.mxu1 %v801_v48 }
 0x2ad   :  { %v270_v53 = vpop.f32.mrf.mxu3  ;;  %v830_v10 = vpop.eup %829 }
 0x2ae   :  { %274 = vst.msk [vmem:[#allocation2] sm:$0xff] %vm241_vm1, %v270_v53  ;;  %v366_v12 = vmul.f32 %v830_v10, %v828_v45 }
 0x2b0   :  { %v367_v16 = vpack.c.bf16 %v366_v12, %v366_v12 }
 0x2b5   :  { %v272_v55 = vpop.f32.mrf.mxu3 }
 0x2b6   :  { %v572_v55 = vpack.c.b16 %v571_v54, %v571_v54 }
 0x2b9   :  { %v312_v56 = vpop.permute.xlu0 %311 }
 0x2ba   :  { %v317_v57 = vsel %vm257_vm2, %v312_v56, 0 }
 0x2bb   :  { %326 = vmatpush.bf16.msrb.mxu0 %v317_v57 }
 0x2bd   :  { %v292_v58 = vpop.f32.mrf.mxu3 }
 0x2be   :  { %v296_v59 = vsel %vm241_vm1, %v292_v58, -inf }
 0x2bf   :  { %297 = vmax.xlane.f32.xlu2 %v296_v59 }
 0x2c5   :  { %v294_v60 = vpop.f32.mrf.mxu3 }
 0x2cd   :  { %v409_v61 = vpop.f32.mrf.mxu3 }
 0x2ce   :  { %v413_v63 = vsel %vm241_vm1, %v409_v61, -inf }
 0x2cf   :  { %414 = vmax.xlane.f32.xlu1 %v413_v63  ;;  %v800_v63 = vld [vmem:[#allocation12] sm:$0xff] }
 0x2d0   :  { %479 = vmatpush.bf16.msra.mxu1 %v800_v63 }
 0x2d5   :  { %v411_v2 = vpop.f32.mrf.mxu3 }
 0x2d7   :  { %368 = vrot.lane.b32.xlu2 %v310_v51, %s1046_s23 }
 0x2df   :  { %655 = vrot.lane.b32.xlu2 %v539_v4, %s1043_s20 }
 0x332   :  { %v298_v5 = vpop.xlane.xlu2 %297 }
 0x333   :  { %v299_v6 = vsub.f32 %v292_v58, %v298_v5 }
 0x335   :  { %v300_v9 = vmul.f32 1.442695, %v299_v6 }
 0x337   :  { %831 = vpow2.f32 %v300_v9 }
 0x33a   :  { %v369_v13 = vpop.permute.xlu2 %368 }
 0x33b   :  { %v374_v14 = vsel %vm257_vm2, %v369_v13, 0 }
 0x33c   :  { %383 = vmatpush.bf16.msrb.mxu2 %v374_v14 }
 0x33d   :  { %v832_v15 = vpop.eup %831 }
 0x33e   :  { %v302_v17 = vsel %vm241_vm1, %v832_v15, 0.0 }
 0x33f   :  { %303 = vadd.xlane.f32.xlu0 %v302_v17  ;;  %775 = vmatmul.msk.bf16.vlgmr.msrb.gmra.mxu2 %vm241_vm1, %v367_v16 }
 0x340   :  { %499 = vmatpush.bf16.xpose.msra.mxu2 %v490_v8 }
 0x342   :  { %v415_v18 = vpop.xlane.xlu1 %414  ;;  %v656_v40 = vpop.permute.xlu2 %655 }
 0x343   :  { %v416_v19 = vsub.f32 %v409_v61, %v415_v18 }
 0x345   :  { %v417_v20 = vmul.f32 1.442695, %v416_v19 }
 0x347   :  { %833 = vpow2.f32 %v417_v20 }
 0x348   :  { %611 = vmatpush.bf16.xpose.msrb.mxu2 %v490_v8 }
 0x34d   :  { %v834_v21 = vpop.eup %833 }
 0x34e   :  { %v419_v22 = vsel %vm241_vm1, %v834_v21, 0.0 }
 0x34f   :  { %420 = vadd.xlane.f32.xlu1 %v419_v22  ;;  %787 = vmatmul.msk.bf16.vlgmr.msra.gmra.mxu2 %vm158_vm0, %v177_v1 }
 0x350   :  { %722 = vmatpush.bf16.msra.mxu2 %v801_v48 }
 0x353   :  { %425 = vrot.lane.b32.xlu0 %v310_v51, %s1047_s24 }
 0x354   :  { %723 = vmatpush.bf16.msra.mxu2 %v800_v63 }
 0x35b   :  { %599 = vrot.lane.b32.xlu0 %v539_v4, %s1037_s21  ;;  %s1048_s21 = smov 24  }
 0x368   :  { %540 = vrot.lane.b32.xlu1 %v539_v4, %s1044_s1 }
 0x3b2   :  { %v304_v23 = vpop.xlane.xlu0 %303 }
 0x3b3   :  { %835 = vrcp.f32 %v304_v23 }
 0x3b9   :  { %v836_v24 = vpop.eup %835 }
 0x3ba   :  { %v306_v25 = vmul.f32 %v836_v24, %v832_v15 }
 0x3bc   :  { %v307_v26 = vpack.c.bf16 %v306_v25, %v306_v25 }
 0x3be   :  { %773 = vmatmul.msk.bf16.vlgmr.msrb.gmra.mxu0 %vm241_vm1, %v307_v26 }
 0x3c2   :  { %v421_v27 = vpop.xlane.xlu1 %420  ;;  %v385_v28 = vpop.f32.mrf.mxu2 }
 0x3c3   :  { %837 = vrcp.f32 %v421_v27 }
 0x3c5   :  { %v426_v29 = vpop.permute.xlu0 %425 }
 0x3c6   :  { %v431_v30 = vsel %vm257_vm2, %v426_v29, 0 }
 0x3c7   :  { %440 = vmatpush.bf16.msra.mxu0 %v431_v30 }
 0x3c9   :  { %v838_v31 = vpop.eup %837 }
 0x3ca   :  { %v423_v32 = vmul.f32 %v838_v31, %v834_v21  ;;  %v387_v33 = vpop.f32.mrf.mxu2 }
 0x3cb   :  { %552 = vmatpush.bf16.xpose.msrb.mxu0 %v490_v8 }
 0x3cc   :  { %v424_v34 = vpack.c.bf16 %v423_v32, %v423_v32 }
 0x3cd   :  { %v600_v35 = vpop.permute.xlu0 %599 }
 0x3ce   :  { %777 = vmatmul.msk.bf16.vlgmr.msra.gmra.mxu0 %vm241_vm1, %v424_v34  ;;  %791 = vmatmul.msk.bf16.vlgmr.msrb.gmra.mxu2 %vm158_vm0, %v600_v35 }
 0x3d2   :  { %v501_v36 = vpop.f32.mrf.mxu2 }
 0x3d3   :  { %667 = vmatpush.bf16.xpose.msra.mxu0 %v490_v8  ;;  %v505_v37 = vsel %vm241_vm1, %v501_v36, -inf }
 0x3d4   :  { %506 = vmax.xlane.f32.xlu0 %v505_v37 }
 0x3da   :  { %v503_v38 = vpop.f32.mrf.mxu2  ;;  %v541_v39 = vpop.permute.xlu1 %540 }
 0x3de   :  { %789 = vmatmul.msk.bf16.vlgmr.msrb.gmra.mxu0 %vm158_vm0, %v541_v39 }
 0x3ee   :  { %793 = vmatmul.msk.bf16.vlgmr.msra.gmra.mxu0 %vm158_vm0, %v656_v40 }
 0x43b   :  { %v328_v41 = vpop.f32.mrf.mxu0 }
 0x443   :  { %v330_v42 = vpop.f32.mrf.mxu0 }
 0x447   :  { %v507_v57 = vpop.xlane.xlu0 %506 }
 0x448   :  { %v508_v58 = vsub.f32 %v501_v36, %v507_v57 }
 0x44a   :  { %v509_v59 = vmul.f32 1.442695, %v508_v58 }
 0x44b   :  { %v442_v43 = vpop.f32.mrf.mxu0 }
 0x44c   :  { %839 = vpow2.f32 %v509_v59 }
 0x451   :  { %v613_v44 = vpop.f32.mrf.mxu2 }
 0x452   :  { %v617_v45 = vsel %vm241_vm1, %v613_v44, -inf  ;;  %v840_v60 = vpop.eup %839 }
 0x453   :  { %v444_v46 = vpop.f32.mrf.mxu0  ;;  %618 = vmax.xlane.f32.xlu1 %v617_v45  ;;  %v511_v61 = vsel %vm241_vm1, %v840_v60, 0.0 }
 0x459   :  { %v615_v47 = vpop.f32.mrf.mxu2 }
 0x45b   :  { %v554_v49 = vpop.f32.mrf.mxu0 }
 0x45c   :  { %v558_v50 = vsel %vm241_vm1, %v554_v49, -inf }
 0x45d   :  { %559 = vmax.xlane.f32.xlu2 %v558_v50 }
 0x463   :  { %v556_v51 = vpop.f32.mrf.mxu0 }
 0x46b   :  { %v669_v52 = vpop.f32.mrf.mxu0 }
 0x46c   :  { %447 = vrot.lane.b32.xlu1 %v442_v43, %s1048_s21  ;;  %v673_v53 = vsel %vm241_vm1, %v669_v52, -inf }
 0x46d   :  { %674 = vmax.xlane.f32.xlu0 %v673_v53 }
 0x473   :  { %v671_v56 = vpop.f32.mrf.mxu0 }
 0x474   :  { %573 = vrot.lane.b32.xlu1 %v572_v55, %s1045_s6 }
 0x475   :  { %333 = vrot.lane.b32.xlu2 %v328_v41, %s1035_s18  ;;  %v822_v41 = vld [vmem:[%s1245_s8] ss:$0 sm:$0xff]  ;;  %s1050_s8 = smov [#allocation14]  }
 0x476   :  { %s734_s27 = sshll.u32 %s1050_s8, 4  ;;  %s735_s27 = int_to_ptr.vmem [resolvable:$true] %s734_s27 }
 0x481   :  { %390 = vrot.lane.b32.xlu0 %v385_v28, %s1049_s3 }
 0x4ab   :  { %512 = vadd.xlane.f32.xlu0 %v511_v61 }
 0x4bf   :  { %629 = vrot.lane.b32.xlu0 %v572_v55, %s1046_s23 }
 0x4c6   :  { %v619_v62 = vpop.xlane.xlu1 %618 }
 0x4c7   :  { %v620_v0 = vsub.f32 %v613_v44, %v619_v62 }
 0x4c9   :  { %v621_v1 = vmul.f32 1.442695, %v620_v0 }
 0x4cb   :  { %841 = vpow2.f32 %v621_v1 }
 0x4d0   :  { %v560_v2 = vpop.xlane.xlu2 %559 }
 0x4d1   :  { %v842_v3 = vpop.eup %841  ;;  %v561_v4 = vsub.f32 %v554_v49, %v560_v2 }
 0x4d2   :  { %v623_v5 = vsel %vm241_vm1, %v842_v3, 0.0 }
 0x4d3   :  { %v562_v6 = vmul.f32 1.442695, %v561_v4  ;;  %624 = vadd.xlane.f32.xlu1 %v623_v5 }
 0x4d5   :  { %843 = vpow2.f32 %v562_v6 }
 0x4d8   :  { %v334_v7 = vpop.permute.xlu2 %333 }
 0x4d9   :  { %337 = vst.msk [vmem:[#allocation2] sm:$0xff] %vm336_vm3, %v334_v7 }
 0x4db   :  { %v844_v9 = vpop.eup %843 }
 0x4dc   :  { %v564_v10 = vsel %vm241_vm1, %v844_v9, 0.0 }
 0x4dd   :  { %565 = vadd.xlane.f32.xlu2 %v564_v10 }
 0x4de   :  { %v448_v11 = vpop.permute.xlu1 %447 }
 0x4e0   :  { %v675_v12 = vpop.xlane.xlu0 %674 }
 0x4e1   :  { %v676_v13 = vsub.f32 %v669_v52, %v675_v12 }
 0x4e3   :  { %v677_v8 = vmul.f32 1.442695, %v676_v13 }
 0x4e5   :  { %845 = vpow2.f32 %v677_v8 }
 0x4e6   :  { %v574_v14 = vpop.permute.xlu1 %573 }
 0x4e7   :  { %v579_v15 = vsel %vm257_vm2, %v574_v14, 0 }
 0x4e8   :  { %588 = vmatpush.bf16.msrb.mxu1 %v579_v15 }
 0x4eb   :  { %v846_v16 = vpop.eup %845 }
 0x4ec   :  { %v679_v17 = vsel %vm241_vm1, %v846_v16, 0.0 }
 0x4ed   :  { %680 = vadd.xlane.f32.xlu2 %v679_v17 }
 0x4f3   :  { %v391_v18 = vpop.permute.xlu0 %390 }
 0x4f4   :  { %394 = vst.msk [vmem:[#allocation2] sm:$0xff] %vm393_vm4, %v391_v18 }
 0x4f5   :  { %451 = vst.msk [vmem:[#allocation2] sm:$0xff] %vm450_vm5, %v448_v11 }
 0x4fc   :  { %v452_v19 = vld [vmem:[#allocation2] sm:$0xff] }
 0x4fd   :  { %v453_v20 = vpack.c.bf16 %v452_v19, %v452_v19 }
 0x4ff   :  { %786 = vmatmul.msk.bf16.vlgmr.msra.gmra.mxu1 %vm158_vm0, %v453_v20 }
 0x505   :  { %685 = vrot.lane.b32.xlu2 %v572_v55, %s1047_s24 }
 0x51e   :  { %v513_v21 = vpop.xlane.xlu0 %512 }
 0x51f   :  { %847 = vrcp.f32 %v513_v21 }
 0x525   :  { %v848_v22 = vpop.eup %847 }
 0x526   :  { %v515_v23 = vmul.f32 %v848_v22, %v840_v60 }
 0x528   :  { %v516_v24 = vpack.c.bf16 %v515_v23, %v515_v23 }
 0x52a   :  { %788 = vmatmul.msk.bf16.vlgmr.msrb.gmra.mxu3 %vm241_vm1, %v516_v24 }
 0x531   :  { %v630_v25 = vpop.permute.xlu0 %629 }
 0x532   :  { %v635_v26 = vsel %vm257_vm2, %v630_v25, 0 }
 0x533   :  { %644 = vmatpush.bf16.msra.mxu3 %v635_v26 }
 0x546   :  { %v625_v27 = vpop.xlane.xlu1 %624 }
 0x547   :  { %849 = vrcp.f32 %v625_v27 }
 0x54d   :  { %v850_v28 = vpop.eup %849 }
 0x54e   :  { %v627_v29 = vmul.f32 %v850_v28, %v842_v3 }
 0x550   :  { %v628_v30 = vpack.c.bf16 %v627_v29, %v627_v29  ;;  %v566_v31 = vpop.xlane.xlu2 %565 }
 0x551   :  { %851 = vrcp.f32 %v566_v31 }
 0x552   :  { %792 = vmatmul.msk.bf16.vlgmr.msra.gmra.mxu3 %vm241_vm1, %v628_v30 }
 0x557   :  { %v852_v32 = vpop.eup %851 }
 0x558   :  { %v568_v33 = vmul.f32 %v852_v32, %v844_v9 }
 0x55a   :  { %v569_v34 = vpack.c.bf16 %v568_v33, %v568_v33 }
 0x55c   :  { %790 = vmatmul.msk.bf16.vlgmr.msrb.gmra.mxu1 %vm241_vm1, %v569_v34 }
 0x560   :  { %v681_v35 = vpop.xlane.xlu2 %680 }
 0x561   :  { %853 = vrcp.f32 %v681_v35 }
 0x567   :  { %v854_v36 = vpop.eup %853 }
 0x568   :  { %v683_v37 = vmul.f32 %v854_v36, %v846_v16  ;;  %v686_v38 = vpop.permute.xlu2 %685 }
 0x569   :  { %v691_v39 = vsel %vm257_vm2, %v686_v38, 0 }
 0x56a   :  { %v684_v40 = vpack.c.bf16 %v683_v37, %v683_v37  ;;  %700 = vmatpush.bf16.msra.mxu1 %v691_v39 }
 0x56d   :  { %794 = vmatmul.msk.bf16.vlgmr.msra.gmra.mxu1 %vm241_vm1, %v684_v40 }
 0x57c   :  { %v481_v42 = vpop.f32.mrf.mxu1 }
 0x57d   :  { %v482_v43 = vadd.f32 %v822_v41, %v481_v42 }
 0x57f   :  { %485 = vst.msk [vmem:[#allocation14] sm:$0xff] %vm158_vm0, %v482_v43 }
 0x584   :  { %v483_v44 = vpop.f32.mrf.mxu1 }
 0x5ad   :  { %v532_v45 = vpop.f32.mrf.mxu3 }
 0x5ae   :  { %536 = vst.msk [vmem:[#allocation2] sm:$0xff] %vm241_vm1, %v532_v45 }
 0x5b5   :  { %v534_v46 = vpop.f32.mrf.mxu3 }
 0x5d5   :  { %v646_v47 = vpop.f32.mrf.mxu3 }
 0x5d6   :  { %651 = vrot.lane.b32.xlu1 %v646_v47, %s1049_s3 }
 0x5d9   :  { %v590_v49 = vpop.f32.mrf.mxu1 }
 0x5da   :  { %595 = vrot.lane.b32.xlu0 %v590_v49, %s1035_s18 }
 0x5dd   :  { %v648_v50 = vpop.f32.mrf.mxu3 }
 0x5e1   :  { %v592_v51 = vpop.f32.mrf.mxu1 }
 0x5ea   :  { %v702_v52 = vpop.f32.mrf.mxu1 }
 0x5eb   :  { %707 = vrot.lane.b32.xlu0 %v702_v52, %s1048_s21 }
 0x5f2   :  { %v704_v53 = vpop.f32.mrf.mxu1 }
 0x648   :  { %v652_v55 = vpop.permute.xlu1 %651 }
 0x64c   :  { %v596_v54 = vpop.permute.xlu0 %595 }
 0x64d   :  { %598 = vst.msk [vmem:[#allocation2] sm:$0xff] %vm336_vm3, %v596_v54 }
 0x64e   :  { %654 = vst.msk [vmem:[#allocation2] sm:$0xff] %vm393_vm4, %v652_v55 }
 0x65d   :  { %v708_v56 = vpop.permute.xlu0 %707 }
 0x65e   :  { %710 = vst.msk [vmem:[#allocation2] sm:$0xff] %vm450_vm5, %v708_v56 }
 0x665   :  { %v711_v57 = vld [vmem:[#allocation2] sm:$0xff] }
 0x666   :  { %v712_v58 = vpack.c.bf16 %v711_v57, %v711_v57 }
 0x668   :  { %795 = vmatmul.msk.bf16.vlgmr.msra.gmra.mxu2 %vm158_vm0, %v712_v58 }
 0x6eb   :  { %v725_v59 = vpop.f32.mrf.mxu2 }
 0x6ec   :  { %v726_v60 = vadd.f32 %v822_v41, %v725_v59 }
 0x6ee   :  { %729 = vst.msk [vmem:[#allocation14 + $0x8] sm:$0xff] %vm158_vm0, %v726_v60 }
 0x6ef   :  { %742 = dma.vmem_to_hbm [thread:$0]  %s735_s27, 256, %s737_s30, [#allocation5], %s1034_s17, %s1034_s17, %s1035_s18  }
 0x6f3   :  { %v727_v61 = vpop.f32.mrf.mxu2 }
 0x6f4   :  { %1031 = dma.done.wait [#allocation5], 256  }
 0x6f5   :  { %1032 = vsyncadd [#allocation5], 4294967040 }
 0x6f6   :  { %747 = vsyncpa [#allocation4], 1 }
 0x6f7   :  { %748 = vsyncpa [#allocation7], 1 }
 0x6f8   :  { %749 = vsyncpa [#allocation10], 1 }
 0x6f9   :  { %750 = vsyncpa [#allocation13], 1 }
 0x6fa   :  { %751 = vsyncpa [#allocation5], 1 }

</bundles_post_ra>
